<compile_context>
chip_gen: v5e
topology: v5e:2x2
jax: 0.10.0
libtpu: 0.0.40
codegen_flags: <defaults>
</compile_context>

<pallas_src>
import functools

import numpy as np
import jax
import jax.numpy as jnp
from jax.experimental import pallas as pl
from jax.experimental.pallas import tpu as pltpu

_FEATS = 16          # flattened 4x4 board
_PREDS = 16          # 12 real predicates (4 row + 4 col + 4 block) + 4 pads
_NUM_REAL_PRED = 12
_PAD_BIAS = 60.0     # log(sigmoid(60)) ~ -9e-27  ->  neutral in the f32 sum


def pack_sudoku_ltn_params(w_row, b_row, w_col, b_col, w_blk, b_blk):
    """One-time host-side packing of the three Linear(4,1) layers.

    Returns (w_hi, w_lo, bias):
      w_hi : (16, 16) bf16  predicate x flattened-board weight, high bf16 part
      w_lo : (16, 16) bf16  low bf16 part (w_hi + w_lo == w to ~2^-17 rel)
      bias : (16, 1)  f32   per-predicate bias; the 4 pad rows get +60 so
                            their log-sigmoid contribution is ~0.
    """
    wr = np.asarray(w_row, np.float32).reshape(-1)
    wc = np.asarray(w_col, np.float32).reshape(-1)
    wb = np.asarray(w_blk, np.float32).reshape(-1)
    br = float(np.asarray(b_row, np.float32).reshape(-1)[0])
    bc = float(np.asarray(b_col, np.float32).reshape(-1)[0])
    bb = float(np.asarray(b_blk, np.float32).reshape(-1)[0])

    w = np.zeros((_PREDS, _FEATS), np.float32)
    bias = np.full((_PREDS, 1), _PAD_BIAS, np.float32)

    p = 0
    # Row predicates: score_p = sum_j w_row[j] * board[i, j]
    for i in range(4):
        for j in range(4):
            w[p, 4 * i + j] = wr[j]
        bias[p, 0] = br
        p += 1
    # Column predicates: score_p = sum_i w_col[i] * board[i, j]
    for j in range(4):
        for i in range(4):
            w[p, 4 * i + j] = wc[i]
        bias[p, 0] = bc
        p += 1
    # 2x2 block predicates (torch .flatten() order inside each block).
    for i in (0, 2):
        for j in (0, 2):
            w[p, 4 * i + j] = wb[0]
            w[p, 4 * i + j + 1] = wb[1]
            w[p, 4 * (i + 1) + j] = wb[2]
            w[p, 4 * (i + 1) + j + 1] = wb[3]
            bias[p, 0] = bb
            p += 1
    assert p == _NUM_REAL_PRED

    w_f32 = jnp.asarray(w)
    w_hi = w_f32.astype(jnp.bfloat16)
    w_lo = (w_f32 - w_hi.astype(jnp.float32)).astype(jnp.bfloat16)
    return w_hi, w_lo, jnp.asarray(bias)


def _sudoku_ltn_kernel(xT_ref, w_hi_ref, w_lo_ref, bias_ref, out_ref):
    # xT_ref : (16, bt) bf16 -- features on sublanes, boards on lanes
    # w_*_ref: (16, 16) bf16 -- predicate x feature weights (host-packed hi/lo)
    # bias   : (16, 1)  f32  -- per-predicate bias (+60 for the 4 pad rows)
    # out    : (1, bt)  f32  -- per-board result (lane-dense store)
    x = xT_ref[...]
    scores = (jnp.dot(w_hi_ref[...], x, preferred_element_type=jnp.float32)
              + jnp.dot(w_lo_ref[...], x, preferred_element_type=jnp.float32)
              + bias_ref[...])                                   # (16, bt) f32
    # Stable log(sigmoid(s)) = min(s, 0) - log(1 + exp(-|s|)); no -inf underflow.
    log_sig = jnp.minimum(scores, 0.0) - jnp.log(1.0 + jnp.exp(-jnp.abs(scores)))
    # prod_p sigmoid(s_p) = exp(sum_p log_sigmoid(s_p)); sublane reduce -> (1, bt).
    out_ref[...] = jnp.exp(jnp.sum(log_sig, axis=0, keepdims=True))


def _round_up(n, m):
    return ((n + m - 1) // m) * m


@functools.partial(jax.jit, static_argnames=("block_boards",))
def sudoku_ltn_forward_batched(boards, w_hi, w_lo, bias, *, block_boards=8192):
    """boards: (B, 4, 4) or (B, 16), integer-valued Sudoku digits (exact in
    bf16). Returns (B,) f32 — one SudokuLTN forward result per board."""
    B = boards.shape[0]
    # Layout plumbing (outside the kernel): compact bf16, boards on the lane
    # axis so every in-kernel vreg is lane-dense.
    xT = boards.reshape(B, _FEATS).astype(jnp.bfloat16).T        # (16, B)

    # Block size: multiple of 128, capped so moderate batches still produce
    # >= 2 grid steps (lets the "parallel" axis shard across v7x's 2 TCs).
    b128 = _round_up(B, 128)
    bt = max(128, min(_round_up(int(block_boards), 128),
                      _round_up(max(b128 // 2, 1), 128)))
    Bp = _round_up(B, bt)
    if Bp != B:
        xT = jnp.pad(xT, ((0, 0), (0, Bp - B)))

    out = pl.pallas_call(
        _sudoku_ltn_kernel,
        out_shape=jax.ShapeDtypeStruct((1, Bp), jnp.float32),
        grid=(Bp // bt,),
        in_specs=[
            pl.BlockSpec((_FEATS, bt), lambda i: (0, i)),
            pl.BlockSpec((_PREDS, _FEATS), lambda i: (0, 0)),
            pl.BlockSpec((_PREDS, _FEATS), lambda i: (0, 0)),
            pl.BlockSpec((_PREDS, 1), lambda i: (0, 0)),
        ],
        out_specs=pl.BlockSpec((1, bt), lambda i: (0, i)),
        compiler_params=pltpu.CompilerParams(
            dimension_semantics=("parallel",),   # v7x: batch across both TCs
        ),
    )(xT, w_hi, w_lo, bias)
    return out[0, :B]


def sudoku_ltn_forward(board, w_hi, w_lo, bias):
    """Single-board API matching the PyTorch module: (4, 4) board -> (1,) f32."""
    return sudoku_ltn_forward_batched(board.reshape(1, 4, 4), w_hi, w_lo, bias)


def _reference_forward_np(boards, w_row, b_row, w_col, b_col, w_blk, b_blk):
    """Numpy float64 reference mirroring the PyTorch loops, vectorized over B."""
    b = np.asarray(boards, np.float64)                       # (B, 4, 4)
    wr = np.asarray(w_row, np.float64).reshape(-1)
    wc = np.asarray(w_col, np.float64).reshape(-1)
    wb = np.asarray(w_blk, np.float64).reshape(-1)
    br = float(np.asarray(b_row, np.float64).reshape(-1)[0])
    bc = float(np.asarray(b_col, np.float64).reshape(-1)[0])
    bb = float(np.asarray(b_blk, np.float64).reshape(-1)[0])

    def sig(z):
        return 1.0 / (1.0 + np.exp(-z))

    res = np.ones(b.shape[0], np.float64)
    for i in range(4):
        res *= sig(b[:, i, :] @ wr + br)
    for j in range(4):
        res *= sig(b[:, :, j] @ wc + bc)
    for i in (0, 2):
        for j in (0, 2):
            blk = b[:, i:i + 2, j:j + 2].reshape(b.shape[0], 4)
            res *= sig(blk @ wb + bb)
    return res


if __name__ == "__main__":
    key = jax.random.PRNGKey(0)
    kb, kr, kbr, kc, kbc, kk, kbk = jax.random.split(key, 7)

    # Small batch of 4x4 boards with entries in {1,2,3,4}, deterministic.
    B = 512
    boards = jax.random.randint(kb, (B, 4, 4), 1, 5).astype(jnp.float32)

    # Linear(4, 1) params, initialized like torch (uniform in +-1/sqrt(4)).
    bound = 0.5
    w_row = jax.random.uniform(kr, (1, 4), jnp.float32, -bound, bound)
    b_row = jax.random.uniform(kbr, (1,), jnp.float32, -bound, bound)
    w_col = jax.random.uniform(kc, (1, 4), jnp.float32, -bound, bound)
    b_col = jax.random.uniform(kbc, (1,), jnp.float32, -bound, bound)
    w_blk = jax.random.uniform(kk, (1, 4), jnp.float32, -bound, bound)
    b_blk = jax.random.uniform(kbk, (1,), jnp.float32, -bound, bound)

    # One-time host-side parameter packing (incl. the bf16 hi/lo weight split).
    w_hi, w_lo, bias = pack_sudoku_ltn_params(w_row, b_row, w_col, b_col,
                                              w_blk, b_blk)

    # Batched path: the block cap makes this a 2-step grid (exercises the
    # pipeline and the "parallel" batch axis / v7x megacore sharding).
    out = sudoku_ltn_forward_batched(boards, w_hi, w_lo, bias,
                                     block_boards=8192)
    out = jax.block_until_ready(out)

    ref = _reference_forward_np(boards, w_row, b_row, w_col, b_col, w_blk, b_blk)
    assert out.shape == (B,)
    np.testing.assert_allclose(np.asarray(out, np.float64), ref,
                               rtol=2e-3, atol=1e-12)

    # Single-board API matching the PyTorch module's forward signature.
    out0 = jax.block_until_ready(sudoku_ltn_forward(boards[0], w_hi, w_lo, bias))
    assert out0.shape == (1,)
    np.testing.assert_allclose(np.asarray(out0, np.float64), ref[0:1],
                               rtol=2e-3, atol=1e-12)

    print("KERNEL_OK")
</pallas_src>

<mosaic_0001>
module attributes {stable_mosaic.version = 11 : i64} {
  func.func @_sudoku_ltn_kernel(%arg0: i32, %arg1: memref<16x256xbf16, #tpu.memory_space<vmem>>, %arg2: memref<16x16xbf16, #tpu.memory_space<vmem>>, %arg3: memref<16x16xbf16, #tpu.memory_space<vmem>>, %arg4: memref<16x1xf32, #tpu.memory_space<vmem>>, %arg5: memref<1x256xf32, #tpu.memory_space<vmem>>) attributes {dimension_semantics = [#tpu.dimension_semantics<parallel>], iteration_bounds = array<i64: 2>, scalar_prefetch = 0 : i64, scratch_operands = 0 : i64, tpu.core_type = #tpu.core_type<tc>, window_params = [{transform_indices = @transform_0, window_bounds = array<i64: 16, 256>}, {pipeline_mode = #tpu.pipeline_mode<synchronous>, transform_indices = @transform_1, window_bounds = array<i64: 16, 16>}, {pipeline_mode = #tpu.pipeline_mode<synchronous>, transform_indices = @transform_2, window_bounds = array<i64: 16, 16>}, {pipeline_mode = #tpu.pipeline_mode<synchronous>, transform_indices = @transform_3, window_bounds = array<i64: 16, 1>}, {transform_indices = @transform_4, window_bounds = array<i64: 1, 256>}]} {
    %c0 = arith.constant 0 : index
    %c0_0 = arith.constant 0 : index
    %0 = vector.load %arg1[%c0, %c0_0] : memref<16x256xbf16, #tpu.memory_space<vmem>>, vector<16x256xbf16>
    %c0_1 = arith.constant 0 : index
    %c0_2 = arith.constant 0 : index
    %1 = vector.load %arg2[%c0_1, %c0_2] : memref<16x16xbf16, #tpu.memory_space<vmem>>, vector<16x16xbf16>
    %cst = arith.constant dense<0.000000e+00> : vector<16x256xf32>
    %2 = tpu.matmul %1, %0, %cst {dimension_numbers = #tpu.dot_dimension_numbers<[1], [0], [0], [1], [0, 0, 1, 1], [], []>} : vector<16x16xbf16>, vector<16x256xbf16>, vector<16x256xf32> -> vector<16x256xf32>
    %c0_3 = arith.constant 0 : index
    %c0_4 = arith.constant 0 : index
    %3 = vector.load %arg3[%c0_3, %c0_4] : memref<16x16xbf16, #tpu.memory_space<vmem>>, vector<16x16xbf16>
    %cst_5 = arith.constant dense<0.000000e+00> : vector<16x256xf32>
    %4 = tpu.matmul %3, %0, %cst_5 {dimension_numbers = #tpu.dot_dimension_numbers<[1], [0], [0], [1], [0, 0, 1, 1], [], []>} : vector<16x16xbf16>, vector<16x256xbf16>, vector<16x256xf32> -> vector<16x256xf32>
    %5 = arith.addf %2, %4 : vector<16x256xf32>
    %c0_6 = arith.constant 0 : index
    %c0_7 = arith.constant 0 : index
    %6 = vector.load %arg4[%c0_6, %c0_7] : memref<16x1xf32, #tpu.memory_space<vmem>>, vector<16x1xf32>
    %7 = vector.broadcast %6 : vector<16x1xf32> to vector<16x256xf32>
    %8 = arith.addf %5, %7 : vector<16x256xf32>
    %cst_8 = arith.constant 0.000000e+00 : f32
    %9 = vector.broadcast %cst_8 : f32 to vector<16x256xf32>
    %10 = arith.minimumf %8, %9 : vector<16x256xf32>
    %11 = math.absf %8 : vector<16x256xf32>
    %cst_9 = arith.constant 0.000000e+00 : f32
    %12 = vector.broadcast %cst_9 : f32 to vector<16x256xf32>
    %13 = arith.subf %12, %11 : vector<16x256xf32>
    %14 = math.exp %13 : vector<16x256xf32>
    %cst_10 = arith.constant 1.000000e+00 : f32
    %15 = vector.broadcast %cst_10 : f32 to vector<16x256xf32>
    %16 = arith.addf %15, %14 : vector<16x256xf32>
    %17 = math.log %16 : vector<16x256xf32>
    %18 = arith.subf %10, %17 : vector<16x256xf32>
    %cst_11 = arith.constant dense<0.000000e+00> : vector<256xf32>
    %19 = vector.multi_reduction <add>, %18, %cst_11 [0] : vector<16x256xf32> to vector<256xf32>
    %20 = vector.shape_cast %19 : vector<256xf32> to vector<1x256xf32>
    %21 = math.exp %20 : vector<1x256xf32>
    %c0_12 = arith.constant 0 : index
    %c0_13 = arith.constant 0 : index
    %22 = vector.load %arg5[%c0_12, %c0_13] : memref<1x256xf32, #tpu.memory_space<vmem>>, vector<1x256xf32>
    tpu.vector_store %arg5[%c0_12, %c0_13], %21 {strides = array<i32>} : memref<1x256xf32, #tpu.memory_space<vmem>>, vector<1x256xf32>,
    return
  }
  func.func @transform_0(%arg0: i32) -> (i32, i32) {
    %c0_i32 = arith.constant 0 : i32
    %c0_i32_0 = arith.constant 0 : i32
    return %c0_i32, %arg0 : i32, i32
  }
  func.func @transform_1(%arg0: i32) -> (i32, i32) {
    %c0_i32 = arith.constant 0 : i32
    %c0_i32_0 = arith.constant 0 : i32
    %c0_i32_1 = arith.constant 0 : i32
    return %c0_i32, %c0_i32_0 : i32, i32
  }
  func.func @transform_2(%arg0: i32) -> (i32, i32) {
    %c0_i32 = arith.constant 0 : i32
    %c0_i32_0 = arith.constant 0 : i32
    %c0_i32_1 = arith.constant 0 : i32
    return %c0_i32, %c0_i32_0 : i32, i32
  }
  func.func @transform_3(%arg0: i32) -> (i32, i32) {
    %c0_i32 = arith.constant 0 : i32
    %c0_i32_0 = arith.constant 0 : i32
    %c0_i32_1 = arith.constant 0 : i32
    return %c0_i32, %c0_i32_0 : i32, i32
  }
  func.func @transform_4(%arg0: i32) -> (i32, i32) {
    %c0_i32 = arith.constant 0 : i32
    %c0_i32_0 = arith.constant 0 : i32
    return %c0_i32, %arg0 : i32, i32
  }
}

</mosaic_0001>

<bundles_post_ra>
// kernel: sudoku_ltn_forward_batched.1
= control target key start
LH: loop header
LB: loop body
LE: loop exit
PB: predicated region body
PF: predicated region fallthrough
CT: control target
= control target key end

     0   :  { %9 = vsyncpa [#allocation4], 0  ;;  %s786_s0 = inlined_call_operand.vmem [shape: bf16[16,512], index: 0, kind: input, shape index: {}]   ;;  %s787_s1 = inlined_call_operand.vmem [shape: bf16[16,16], index: 1, kind: input, shape index: {}]   ;;  %s788_s2 = inlined_call_operand.vmem [shape: bf16[16,16], index: 2, kind: input, shape index: {}]   ;;  %s789_s3 = inlined_call_operand.vmem [shape: f32[16,1], index: 3, kind: input, shape index: {}]   ;;  %s790_s4 = inlined_call_operand.hbm [shape: f32[1,512], index: 4, kind: output, shape index: {}]  }
   0x1   :  { %11 = vsyncpa [#allocation4 + $0x1], 0  ;;  %s679_s15 = smov 0   ;;  %s681_s16 = smov 0  }
   0x2   :  { %s683_s17 = smov 0   ;;  %s685_s18 = smov 0  }
   0x3 LB: > { %s489_s19 = sadd.s32 4294967295, %s651_s18   ;;  %s490_s20 = sadd.s32 4294967294, %s651_s18   ;;  %s651_s18 = sphi %s685_s18, %s796_s18   ;;  %s647_s17 = sphi %s683_s17, %s795_s17   ;;  %s643_s16 = sphi %s681_s16, %s794_s16   ;;  %s639_s15 = sphi %s679_s15, %s793_s15  }
   0x4   : > { %s702_s21 = sadd.s32 1, %s651_s18   ;;  %s24_s22 = sadd.s32 1, %s647_s17 }
   0x5   : > { %s21_s23 = ssub.s32 %s651_s18, %s702_s21  ;;  %p31_p0 = scmp.ne.s32.totalorder %s647_s17, %s643_s16 }
   0x6   : > { %p22_p1 = scmp.eq.s32.totalorder %s21_s23, 0  ;;  %p32_p2 = scmp.eq.s32.totalorder %s651_s18, 0 }
   0x7   : > { %p124_p3 = scmp.eq.s32.totalorder %s489_s19, 1  ;;  %p129_p4 = scmp.ne.s32.totalorder %s643_s16, %s639_s15 }
   0x8   : > { %s715_s24 = scalar_select %p22_p1, %s647_s17, %s24_s22  }
   0x9   : > { %p33_p5 = por %p32_p2, %p31_p0  ;;  %p717_p6 = por %p124_p3, %p31_p0 }
   0xa   : > { %p130_p7 = scmp.eq.s32.totalorder %s490_s20, 1  ;;  %p492_p9 = scmp.ge.s32.totalorder %s651_s18, 2 }
   0xc   : > { %p721_p8 = por %p130_p7, %p129_p4  ;;  %155 = sbr.rel (%p492_p9) target bundleno = 23 (0x17), region = 28 }
  0x11   : > { %158 = sbr.rel (!%p33_p5) target bundleno = 23 (0x17), region = 32  ;;  %s160_s27 = sand.u32 (%p33_p5), 1, %s647_s17  }
  0x12   : > { %s523_s28 = sshll.u32 (%p33_p5), %s651_s18, 3  ;;  %s493_s29 = sshll.u32 (%p33_p5), %s160_s27, 4 }
  0x13   : > { %s165_s6 = scalar_lea.vmem (%p33_p5), %s786_s0, %s523_s28  ;;  %s162_s7 = scalar_lea.vmem (%p33_p5), [#allocation2], %s493_s29 }
  0x14   : > { %v196_v0 = vld [vmem:[%s165_s6] sm:$0xff] (%p33_p5)  ;;  %v198_v1 = vld [vmem:[%s165_s6 + $0x10] sm:$0xff] (%p33_p5) }
  0x15   : > { %197 = vst [vmem:[%s162_s7] sm:$0xff] (%p33_p5), %v196_v0 }
  0x16   : > { %199 = vst [vmem:[%s162_s7 + $0x8] sm:$0xff] %v198_v1 }
  0x17 PF: > { %p496_p10 = scmp.ge.s32.totalorder %s651_s18, 1  ;;  %p204_p11 = scmp.lt.s32.totalorder %s651_s18, 3 }
  0x19   : > { %p205_p12 = pnand %p496_p10, %p204_p11 }
  0x1a   : > { %s736_s8 = sand.u32 (!%p205_p12), 1, %s643_s16   ;;  %s520_s29 = sshll.u32 (!%p205_p12), %s489_s19, 1 }
  0x1b   : > { %208 = sbr.rel (%p205_p12) target bundleno = 239 (0xef), region = 70  ;;  %s497_s11 = sshll.u32 (!%p205_p12), %s736_s8, 4 }
  0x1c   : > { %s213_s12 = scalar_lea.vmem (!%p205_p12), [#allocation2], %s497_s11  ;;  %s498_s28 = sshll.u32 (!%p205_p12), %s736_s8, 1 }
  0x1d   : > { %s420_s6 = scalar_lea.hbm (!%p205_p12), %s790_s4, %s520_s29  ;;  %s235_s7 = scalar_lea.vmem (!%p205_p12), [#allocation3], %s498_s28 }
  0x1e   : > { %s422_s9 = sshll.u32 (!%p205_p12), %s235_s7, 4  ;;  %s424_s10 = sshll.u32 (!%p205_p12), %s420_s6, 4  ;;  %s423_s9 = int_to_ptr.vmem [resolvable:$true] %s422_s9  ;;  %s425_s10 = int_to_ptr.hbm [resolvable:$true] %s424_s10 }
  0x1f   : > { %s410_s19 = scalar_lea.sflag (!%p205_p12), [#allocation4], %s736_s8  ;;  %s603_s11 = sshra.s32 (!%p205_p12), %s425_s10, 4  ;;  %s604_s11 = int_to_ptr.hbm [resolvable:$true] %s603_s11 }
  0x20   : > { %v328_v2 = vld [vmem:[%s789_s3] sm:$0xff]  ;;  %v653_v3 = vmov 0   ;;  %v525_v5 = vld [vmem:[%s213_s12 + $0x4] sm:$0xf0]  ;;  %v507_v8 = vld [vmem:[%s213_s12 + $0x8] sm:$0xf0]  ;;  %p610_p2 = scmp.lt.s32.totalorder %s604_s11, %s790_s4 }
  0x21   : > { %568 = vset.pattern.permute.xlu0 %v653_v3  ;;  %v505_v4 = vld [vmem:[%s213_s12] sm:$0xf]  ;;  %v524_v6 = vld [vmem:[%s213_s12 + $0x4] sm:$0xf]  ;;  %vm260_vm0 = vcmask 130048   ;;  %v329_v12 = vld [vmem:[%s789_s3 + $0x8] sm:$0xff] }
  0x22   : > { %332 = vperm.xlu0 %568, %v328_v2   ;;  %v506_v7 = vor.u32 %v525_v5, %v505_v4  ;;  %v510_v9 = vor.u32 %v524_v6, %v507_v8  ;;  %v527_v10 = vld [vmem:[%s788_s2] sm:$0xff]  ;;  %vm401_vm1 = vcmask 1040384   ;;  %s605_s12 = scalar_lea.hbm %s604_s11, 2  ;;  %s609_s20 = scalar_lea.hbm %s790_s4, 4 }
  0x23   : > { %v526_v11 = vld [vmem:[%s787_s1] sm:$0xff]  ;;  %p606_p13 = scmp.ne.s32.totalorder %s604_s11, %s605_s12  ;;  %p611_p3 = scmp.lt.s32.totalorder %s609_s20, %s605_s12 }
  0x24   : > { %271 = vmatpush.bf16.msra.mxu0 %v506_v7  ;;  %307 = vmatpush.bf16.msra.mxu2 %v506_v7 }
  0x25   : > { %285 = vmatpush.bf16.msra.mxu1 %v510_v9  ;;  %321 = vmatpush.bf16.msra.mxu3 %v510_v9  ;;  %p607_p0 = pnand %p606_p13, %p717_p6  ;;  %p612_p4 = por %p611_p3, %p610_p2 }
  0x27   : > { %511 = vmatmul.msk.bf16.vlgmr.msra.gmra.mxu0 %vm260_vm0, %v527_v10  ;;  %517 = vmatmul.msk.bf16.vlgmr.msra.gmra.mxu2 %vm260_vm0, %v526_v11  ;;  %p608_p1 = pneg %p607_p0 }
  0x28   : > { %512 = vmatmul.msk.bf16.vlgmr.msra.gmra.mxu1 %vm260_vm0, %v527_v10  ;;  %518 = vmatmul.msk.bf16.vlgmr.msra.gmra.mxu3 %vm260_vm0, %v526_v11 }
  0x29   : > { %p613_p5 = pnand %p612_p4, %p608_p1 }
  0x2a   : > { %337 = vperm.xlu0 %568, %v329_v12  }
  0x94   : > { %v333_v15 = vpop.permute.xlu0 %332 }
  0x9c   : > { %v338_v33 = vpop.permute.xlu0 %337 }
  0xa4   : > { %v273_v13 = vpop.f32.mrf.mxu0 }
  0xa5   : > { %v287_v14 = vpop.f32.mrf.mxu1 }
  0xaa   : > { %v309_v16 = vpop.f32.mrf.mxu2 }
  0xab   : > { %v310_v17 = vadd.f32 %v309_v16, %v273_v13  ;;  %v323_v18 = vpop.f32.mrf.mxu3 }
  0xac   : > { %v324_v19 = vadd.f32 %v323_v18, %v287_v14  ;;  %v275_v26 = vpop.f32.mrf.mxu0 }
  0xad   : > { %v340_v20 = vadd.f32 %v333_v15, %v310_v17  ;;  %v289_v29 = vpop.f32.mrf.mxu1 }
  0xae   : > { %v341_v21 = vadd.f32 %v333_v15, %v324_v19  ;;  %v404_v19 = vlaneseq }
  0xaf   : > { %v348_v22 = vand.u32 2147483647, %v340_v20  ;;  %v344_v55 = vmin.f32 %v340_v20, 0.0 }
  0xb0   : > { %v349_v23 = vand.u32 2147483647, %v341_v21  ;;  %v345_v62 = vmin.f32 %v341_v21, 0.0  ;;  %vm406_vm2 = vcmp.lt.s32.totalorder %v404_v19, 256 }
  0xb1   : > { %v352_v24 = vsub.f32 0.0, %v348_v22 }
  0xb2   : > { %v353_v25 = vsub.f32 0.0, %v349_v23  ;;  %v311_v27 = vpop.f32.mrf.mxu2 }
  0xb3   : > { %v356_v28 = vmul.f32 1.442695, %v352_v24  ;;  %v312_v30 = vadd.f32 %v311_v27, %v275_v26  ;;  %v325_v31 = vpop.f32.mrf.mxu3 }
  0xb4   : > { %v358_v32 = vmul.f32 1.442695, %v353_v25  ;;  %v326_v34 = vadd.f32 %v325_v31, %v289_v29 }
  0xb5   : > { %569 = vpow2.f32 %v356_v28  ;;  %v342_v35 = vadd.f32 %v338_v33, %v312_v30 }
  0xb6   : > { %v343_v36 = vadd.f32 %v338_v33, %v326_v34  ;;  %571 = vpow2.f32 %v358_v32 }
  0xb7   : > { %v350_v37 = vand.u32 2147483647, %v342_v35  ;;  %v346_v56 = vmin.f32 %v342_v35, 0.0 }
  0xb8   : > { %v351_v38 = vand.u32 2147483647, %v343_v36  ;;  %v347_v63 = vmin.f32 %v343_v36, 0.0 }
  0xb9   : > { %v354_v39 = vsub.f32 0.0, %v350_v37 }
  0xba   : > { %v355_v40 = vsub.f32 0.0, %v351_v38 }
  0xbb   : > { %v570_v41 = vpop.eup %569  ;;  %v360_v42 = vmul.f32 1.442695, %v354_v39 }
  0xbc   : > { %v362_v43 = vmul.f32 1.442695, %v355_v40  ;;  %v572_v44 = vpop.eup %571  ;;  %v364_v45 = vadd.f32 1.0, %v570_v41 }
  0xbd   : > { %573 = vpow2.f32 %v360_v42  ;;  %v365_v46 = vadd.f32 1.0, %v572_v44 }
  0xbe   : > { %575 = vpow2.f32 %v362_v43 }
  0xbf   : > { %577 = vlog2.f32 %v364_v45 }
  0xc0   : > { %579 = vlog2.f32 %v365_v46 }
  0xc3   : > { %v574_v47 = vpop.eup %573 }
  0xc4   : > { %v366_v48 = vadd.f32 1.0, %v574_v47  ;;  %v576_v49 = vpop.eup %575 }
  0xc5   : > { %v367_v50 = vadd.f32 1.0, %v576_v49  ;;  %v578_v51 = vpop.eup %577 }
  0xc6   : > { %581 = vlog2.f32 %v366_v48  ;;  %v580_v52 = vpop.eup %579  ;;  %v369_v53 = vmul.f32 0.6931472, %v578_v51 }
  0xc7   : > { %583 = vlog2.f32 %v367_v50  ;;  %v371_v58 = vmul.f32 0.6931472, %v580_v52 }
  0xc8   : > { %v376_v60 = vsub.f32 %v344_v55, %v369_v53 }
  0xc9   : > { %v377_v2 = vsub.f32 %v345_v62, %v371_v58 }
  0xcc   : > { %v582_v54 = vpop.eup %581 }
  0xcd   : > { %v373_v57 = vmul.f32 0.6931472, %v582_v54  ;;  %v584_v59 = vpop.eup %583 }
  0xce   : > { %v375_v0 = vmul.f32 0.6931472, %v584_v59 }
  0xcf   : > { %v378_v61 = vsub.f32 %v346_v56, %v373_v57 }
  0xd0   : > { %v379_v3 = vsub.f32 %v347_v63, %v375_v0 }
  0xd1   : > { %v380_v1 = vadd.f32 %v378_v61, %v376_v60 }
  0xd2   : > { %v387_v5 = vadd.f32 %v379_v3, %v377_v2 }
  0xd3   : > { %v381_v4 = vrot.slane %v380_v1, 4 }
  0xd4   : > { %v388_v7 = vrot.slane %v387_v5, 4 }
  0xd5   : > { %v382_v6 = vadd.f32 %v381_v4, %v380_v1 }
  0xd6   : > { %v389_v9 = vadd.f32 %v388_v7, %v387_v5 }
  0xd7   : > { %v383_v8 = vrot.slane %v382_v6, 2 }
  0xd8   : > { %v390_v11 = vrot.slane %v389_v9, 2 }
  0xd9   : > { %v384_v10 = vadd.f32 %v383_v8, %v382_v6 }
  0xda   : > { %v391_v13 = vadd.f32 %v390_v11, %v389_v9 }
  0xdb   : > { %v385_v12 = vrot.slane %v384_v10, 1 }
  0xdc   : > { %v392_v15 = vrot.slane %v391_v13, 1 }
  0xdd   : > { %v386_v14 = vadd.f32 %v385_v12, %v384_v10 }
  0xde   : > { %v393_v16 = vadd.f32 %v392_v15, %v391_v13 }
  0xdf   : > { %v394_v17 = vmul.f32 1.442695, %v386_v14 }
  0xe0   : > { %v396_v18 = vmul.f32 1.442695, %v393_v16 }
  0xe2   : > { %585 = vpow2.f32 %v396_v18 }
  0xe3   : > { %587 = vpow2.f32 %v394_v17 }
  0xe8   : > { %v586_v20 = vpop.eup %585 }
  0xe9   : > { %v400_v21 = vrot.slane %v586_v20, 7  ;;  %v588_v22 = vpop.eup %587 }
  0xeb   : > { %v402_v23 = vsel %vm401_vm1, %v588_v22, %v400_v21 }
  0xec   : > { %408 = vst.msk [vmem:[%s235_s7] sm:$0x3] %vm406_vm2, %v402_v23 }
  0xed   : > { %616 = shalt.err (!%p613_p5)
}
  0xee   : > { %528 = dma.vmem_to_hbm [thread:$0]  (%p717_p6), %s423_s9, 32, %s425_s10, %s410_s19  }
  0xef PF: > { %s436_s8 = sand.u32 1, %s639_s15   ;;  %p531_p7 = pnand %p492_p9, %p721_p8 }
  0xf0   : > { %s437_s27 = scalar_lea.sflag [#allocation4], %s436_s8 }
  0xf1   : > { %p532_p10 = pneg %p531_p7 }
  0xf3   : > { %634 = dma.done.wait (%p532_p10), %s437_s27, 32  }
  0xf4   : > { %636 = vsyncadd (%p532_p10), %s437_s27, 4294967264  ;;  %p14_p11 = scmp.ge.s32.totalorder %s702_s21, 4   ;;  %s793_s15 = smov %s643_s16 }
  0xf5   : > { %s794_s16 = smov %s647_s17  ;;  %s795_s17 = smov %s715_s24 }
  0xf6   : > { %s796_s18 = smov %s702_s21  ;;  %16 = sbr.rel (!%p14_p11) target bundleno = 3 (0x3), region = 114 }
  0xfb   :  { %443 = vsyncpa [#allocation4], 1 }
  0xfc   :  { %445 = vsyncpa [#allocation4 + $0x1], 1 }

</bundles_post_ra>
